<compile_context>
chip_gen: v7x
topology: tpu7x:2x2x1
jax: 0.10.0
libtpu: 0.0.40
codegen_flags: <defaults>
</compile_context>

<pallas_src>
from functools import partial

import jax
import jax.numpy as jnp
from jax import lax
from jax.experimental import pallas as pl
from jax.experimental.pallas import tpu as pltpu  # noqa: F401  (TPU backend)


def grey_kernel(xh_ref, w_ref, g_ref, be_ref, o_ref, *, L, inv_count, eps):
    """Fused Conv1d(k=3, pad=1) + BatchNorm1d(batch stats) + ReLU, one shot.

    Layout: batch rows are packed along the lane axis, so the "pixel" axis of
    every activation operand is N*L lanes wide.

    xh_ref : (Cin, NT + 2)  packed input with one zero halo column at each end
    w_ref  : (3, Cout, Cin) conv weights, one (Cout, Cin) matrix per tap
    g_ref  : (Cout, 1)      BN gamma
    be_ref : (Cout, 1)      BN beta
    o_ref  : (Cout, NT)     packed output
    """
    NT = o_ref.shape[1]

    # Per-batch-row boundary masks: the packed lane axis concatenates batch
    # rows of length L, so the conv's zero padding must also zero any tap that
    # crosses a row boundary (the global ends are already zero from the halo).
    pos = lax.broadcasted_iota(jnp.int32, (1, NT), 1) % L
    x_prev = jnp.where(pos == 0, 0.0, xh_ref[:, pl.ds(0, NT)])       # x[l-1]
    x_mid = xh_ref[:, pl.ds(1, NT)]                                   # x[l]
    x_next = jnp.where(pos == L - 1, 0.0, xh_ref[:, pl.ds(2, NT)])    # x[l+1]

    # Conv1d(k=3): three small MXU matmuls accumulated in f32.  The conv bias
    # is omitted on purpose: BatchNorm's mean subtraction cancels it exactly.
    y = jnp.dot(w_ref[0], x_prev, preferred_element_type=jnp.float32)
    y = y + jnp.dot(w_ref[1], x_mid, preferred_element_type=jnp.float32)
    y = y + jnp.dot(w_ref[2], x_next, preferred_element_type=jnp.float32)

    # Training-mode BatchNorm over all N*L positions per channel, then ReLU.
    mean = jnp.sum(y, axis=1, keepdims=True) * inv_count              # (Cout,1)
    yc = y - mean
    var = jnp.sum(yc * yc, axis=1, keepdims=True) * inv_count         # biased
    scale = g_ref[...] * lax.rsqrt(var + eps)                         # EUP
    o_ref[...] = jnp.maximum(yc * scale + be_ref[...], 0.0).astype(o_ref.dtype)


@jax.jit
def grey_forward(x_ncl, w_oik, b, gamma, beta):
    """PyTorch-compatible forward.  x_ncl: (N, Cin, L) f32 -> (N, Cout, L) f32.

    `b` (the Conv1d bias) is accepted for signature parity but not used: the
    training-mode BatchNorm that follows subtracts the per-channel batch mean,
    which cancels the bias exactly in the returned tensor.
    """
    del b
    N, Cin, L = x_ncl.shape
    Cout = w_oik.shape[0]
    NT = N * L

    # One-time layout plumbing (tiny): pack batch rows along the lane axis and
    # add one zero halo column at each end for the k=3 taps.
    x_packed = jnp.transpose(x_ncl, (1, 0, 2)).reshape(Cin, NT)        # (Cin,NT)
    x_halo = jnp.pad(x_packed, ((0, 0), (1, 1)))                        # (Cin,NT+2)
    w_taps = jnp.transpose(w_oik, (2, 0, 1))                            # (3,Cout,Cin)
    g2 = gamma.reshape(Cout, 1)
    be2 = beta.reshape(Cout, 1)

    kernel = partial(grey_kernel, L=L, inv_count=1.0 / float(NT), eps=1e-5)

    # Whole problem is VMEM resident -> single kernel invocation (no grid),
    # no multi-phase stats pass, no redundant conv recompute or write-backs.
    out_packed = pl.pallas_call(
        kernel,
        out_shape=jax.ShapeDtypeStruct((Cout, NT), jnp.float32),
    )(x_halo, w_taps, g2, be2)

    return jnp.transpose(out_packed.reshape(Cout, N, L), (1, 0, 2))


def grey_reference(x_ncl, w_oik, b, gamma, beta):
    """Pure-JAX reference mirroring the PyTorch forward (training-mode BN)."""
    y = lax.conv_general_dilated(
        x_ncl, w_oik, window_strides=(1,), padding=((1, 1),),
        dimension_numbers=('NCH', 'OIH', 'NCH'))
    y = y + b[None, :, None]
    mean = jnp.mean(y, axis=(0, 2), keepdims=True)
    var = jnp.mean((y - mean) ** 2, axis=(0, 2), keepdims=True)
    yn = (y - mean) / jnp.sqrt(var + 1e-5)
    out = gamma[None, :, None] * yn + beta[None, :, None]
    return jnp.maximum(out, 0.0)


if __name__ == "__main__":
    # Small shapes consistent with the module: batch=2, C_in=4, C_out=8, L=16.
    N, Cin, Cout, L = 2, 4, 8, 16

    key = jax.random.PRNGKey(0)
    kx, kw, kb = jax.random.split(key, 3)

    # Conv1d-style uniform init bounds; BN gamma=1, beta=0 (fresh module).
    fan_in = Cin * 3
    bound = (1.0 / fan_in) ** 0.5
    w = jax.random.uniform(kw, (Cout, Cin, 3), jnp.float32, -bound, bound)
    b = jax.random.uniform(kb, (Cout,), jnp.float32, -bound, bound)
    gamma = jnp.ones((Cout,), jnp.float32)
    beta = jnp.zeros((Cout,), jnp.float32)

    x = jax.random.normal(kx, (N, Cin, L), jnp.float32)

    out = jax.block_until_ready(grey_forward(x, w, b, gamma, beta))
    ref = grey_reference(x, w, b, gamma, beta)

    assert out.shape == (N, Cout, L)
    assert jnp.allclose(out, ref, atol=1e-4, rtol=1e-4), "mismatch vs reference"

    print("KERNEL_OK")
</pallas_src>

<mosaic_0001>
module attributes {stable_mosaic.version = 11 : i64} {
  func.func @grey_kernel(%arg0: memref<4x34xf32, #tpu.memory_space<vmem>>, %arg1: memref<3x8x4xf32, #tpu.memory_space<vmem>>, %arg2: memref<8x1xf32, #tpu.memory_space<vmem>>, %arg3: memref<8x1xf32, #tpu.memory_space<vmem>>, %arg4: memref<8x32xf32, #tpu.memory_space<vmem>>) attributes {dimension_semantics = [], scalar_prefetch = 0 : i64, scratch_operands = 0 : i64, tpu.core_type = #tpu.core_type<tc>} {
    %0 = tpu.iota {dimensions = array<i32: 1>} : vector<1x32xi32>
    %c16_i32 = arith.constant 16 : i32
    %c0_i32 = arith.constant 0 : i32
    %1 = arith.cmpi eq, %c16_i32, %c0_i32 : i32
    %c1_i32 = arith.constant 1 : i32
    %2 = arith.select %1, %c1_i32, %c16_i32 : i32
    %3 = vector.broadcast %2 : i32 to vector<1x32xi32>
    %4 = arith.remsi %0, %3 : vector<1x32xi32>
    %c0_i32_0 = arith.constant 0 : i32
    %5 = vector.broadcast %c0_i32_0 : i32 to vector<1x32xi32>
    %6 = arith.cmpi ne, %4, %5 : vector<1x32xi32>
    %c0_i32_1 = arith.constant 0 : i32
    %7 = vector.broadcast %c0_i32_1 : i32 to vector<1x32xi32>
    %8 = arith.cmpi slt, %4, %7 : vector<1x32xi32>
    %c0_i32_2 = arith.constant 0 : i32
    %9 = arith.cmpi slt, %2, %c0_i32_2 : i32
    %10 = vector.broadcast %9 : i1 to vector<1x32xi1>
    %11 = vector.broadcast %10 : vector<1x32xi1> to vector<1x32xi1>
    %12 = arith.xori %8, %11 : vector<1x32xi1>
    %13 = arith.andi %12, %6 : vector<1x32xi1>
    %14 = vector.broadcast %2 : i32 to vector<1x32xi32>
    %15 = arith.addi %4, %14 : vector<1x32xi32>
    %16 = arith.select %13, %15, %4 : vector<1x32xi1>, vector<1x32xi32>
    %c0_i32_3 = arith.constant 0 : i32
    %17 = vector.broadcast %c0_i32_3 : i32 to vector<1x32xi32>
    %18 = arith.cmpi eq, %16, %17 : vector<1x32xi32>
    %c0 = arith.constant 0 : index
    %c0_4 = arith.constant 0 : index
    %19 = vector.load %arg0[%c0, %c0_4] : memref<4x34xf32, #tpu.memory_space<vmem>>, vector<4x32xf32>
    %cst = arith.constant 0.000000e+00 : f32
    %20 = vector.shape_cast %18 : vector<1x32xi1> to vector<1x32xi1>
    %21 = vector.broadcast %20 : vector<1x32xi1> to vector<4x32xi1>
    %22 = vector.broadcast %cst : f32 to vector<4x32xf32>
    %23 = arith.select %21, %22, %19 : vector<4x32xi1>, vector<4x32xf32>
    %c0_5 = arith.constant 0 : index
    %c1 = arith.constant 1 : index
    %24 = vector.load %arg0[%c0_5, %c1] : memref<4x34xf32, #tpu.memory_space<vmem>>, vector<4x32xf32>
    %c15_i32 = arith.constant 15 : i32
    %25 = vector.broadcast %c15_i32 : i32 to vector<1x32xi32>
    %26 = arith.cmpi eq, %16, %25 : vector<1x32xi32>
    %c0_6 = arith.constant 0 : index
    %c2 = arith.constant 2 : index
    %27 = vector.load %arg0[%c0_6, %c2] : memref<4x34xf32, #tpu.memory_space<vmem>>, vector<4x32xf32>
    %cst_7 = arith.constant 0.000000e+00 : f32
    %28 = vector.shape_cast %26 : vector<1x32xi1> to vector<1x32xi1>
    %29 = vector.broadcast %28 : vector<1x32xi1> to vector<4x32xi1>
    %30 = vector.broadcast %cst_7 : f32 to vector<4x32xf32>
    %31 = arith.select %29, %30, %27 : vector<4x32xi1>, vector<4x32xf32>
    %c0_8 = arith.constant 0 : index
    %c0_9 = arith.constant 0 : index
    %c0_10 = arith.constant 0 : index
    %32 = vector.load %arg1[%c0_8, %c0_9, %c0_10] : memref<3x8x4xf32, #tpu.memory_space<vmem>>, vector<1x8x4xf32>
    %33 = vector.shape_cast %32 : vector<1x8x4xf32> to vector<8x4xf32>
    %cst_11 = arith.constant dense<0.000000e+00> : vector<8x32xf32>
    %34 = tpu.matmul %33, %23, %cst_11 {dimension_numbers = #tpu.dot_dimension_numbers<[1], [0], [0], [1], [0, 0, 1, 1], [], []>} : vector<8x4xf32>, vector<4x32xf32>, vector<8x32xf32> -> vector<8x32xf32>
    %c1_12 = arith.constant 1 : index
    %c0_13 = arith.constant 0 : index
    %c0_14 = arith.constant 0 : index
    %35 = vector.load %arg1[%c1_12, %c0_13, %c0_14] : memref<3x8x4xf32, #tpu.memory_space<vmem>>, vector<1x8x4xf32>
    %36 = vector.shape_cast %35 : vector<1x8x4xf32> to vector<8x4xf32>
    %cst_15 = arith.constant dense<0.000000e+00> : vector<8x32xf32>
    %37 = tpu.matmul %36, %24, %cst_15 {dimension_numbers = #tpu.dot_dimension_numbers<[1], [0], [0], [1], [0, 0, 1, 1], [], []>} : vector<8x4xf32>, vector<4x32xf32>, vector<8x32xf32> -> vector<8x32xf32>
    %38 = arith.addf %34, %37 : vector<8x32xf32>
    %c2_16 = arith.constant 2 : index
    %c0_17 = arith.constant 0 : index
    %c0_18 = arith.constant 0 : index
    %39 = vector.load %arg1[%c2_16, %c0_17, %c0_18] : memref<3x8x4xf32, #tpu.memory_space<vmem>>, vector<1x8x4xf32>
    %40 = vector.shape_cast %39 : vector<1x8x4xf32> to vector<8x4xf32>
    %cst_19 = arith.constant dense<0.000000e+00> : vector<8x32xf32>
    %41 = tpu.matmul %40, %31, %cst_19 {dimension_numbers = #tpu.dot_dimension_numbers<[1], [0], [0], [1], [0, 0, 1, 1], [], []>} : vector<8x4xf32>, vector<4x32xf32>, vector<8x32xf32> -> vector<8x32xf32>
    %42 = arith.addf %38, %41 : vector<8x32xf32>
    %cst_20 = arith.constant dense<0.000000e+00> : vector<8xf32>
    %43 = vector.multi_reduction <add>, %42, %cst_20 [1] : vector<8x32xf32> to vector<8xf32>
    %44 = vector.shape_cast %43 : vector<8xf32> to vector<8x1xf32>
    %cst_21 = arith.constant 3.125000e-02 : f32
    %45 = vector.broadcast %cst_21 : f32 to vector<8x1xf32>
    %46 = arith.mulf %44, %45 : vector<8x1xf32>
    %47 = vector.broadcast %46 : vector<8x1xf32> to vector<8x32xf32>
    %48 = arith.subf %42, %47 : vector<8x32xf32>
    %49 = arith.mulf %48, %48 : vector<8x32xf32>
    %cst_22 = arith.constant dense<0.000000e+00> : vector<8xf32>
    %50 = vector.multi_reduction <add>, %49, %cst_22 [1] : vector<8x32xf32> to vector<8xf32>
    %51 = vector.shape_cast %50 : vector<8xf32> to vector<8x1xf32>
    %cst_23 = arith.constant 3.125000e-02 : f32
    %52 = vector.broadcast %cst_23 : f32 to vector<8x1xf32>
    %53 = arith.mulf %51, %52 : vector<8x1xf32>
    %c0_24 = arith.constant 0 : index
    %c0_25 = arith.constant 0 : index
    %54 = vector.load %arg2[%c0_24, %c0_25] : memref<8x1xf32, #tpu.memory_space<vmem>>, vector<8x1xf32>
    %cst_26 = arith.constant 9.99999974E-6 : f32
    %55 = vector.broadcast %cst_26 : f32 to vector<8x1xf32>
    %56 = arith.addf %53, %55 : vector<8x1xf32>
    %57 = math.rsqrt %56 : vector<8x1xf32>
    %58 = arith.mulf %54, %57 : vector<8x1xf32>
    %59 = vector.broadcast %58 : vector<8x1xf32> to vector<8x32xf32>
    %60 = arith.mulf %48, %59 : vector<8x32xf32>
    %c0_27 = arith.constant 0 : index
    %c0_28 = arith.constant 0 : index
    %61 = vector.load %arg3[%c0_27, %c0_28] : memref<8x1xf32, #tpu.memory_space<vmem>>, vector<8x1xf32>
    %62 = vector.broadcast %61 : vector<8x1xf32> to vector<8x32xf32>
    %63 = arith.addf %60, %62 : vector<8x32xf32>
    %cst_29 = arith.constant 0.000000e+00 : f32
    %64 = vector.broadcast %cst_29 : f32 to vector<8x32xf32>
    %65 = arith.maximumf %63, %64 : vector<8x32xf32>
    %c0_30 = arith.constant 0 : index
    %c0_31 = arith.constant 0 : index
    %66 = vector.load %arg4[%c0_30, %c0_31] : memref<8x32xf32, #tpu.memory_space<vmem>>, vector<8x32xf32>
    tpu.vector_store %arg4[%c0_30, %c0_31], %65 {strides = array<i32>} : memref<8x32xf32, #tpu.memory_space<vmem>>, vector<8x32xf32>,
    return
  }
}

</mosaic_0001>

<bundles_post_ra>
// kernel: grey_forward.1
= control target key start
LH: loop header
LB: loop body
LE: loop exit
PB: predicated region body
PF: predicated region fallthrough
CT: control target
= control target key end

     0   :  { %v17_v0 = vlaneseq  ;;  %v356_v2 = vmov 0.0   ;;  %vm357_vm0 = vmmov 0   ;;  %s358_s17 = smov 126   ;;  %vm53_vm1 = vcmask 1043456   ;;  %s359_s18 = smov 127   ;;  %s416_s0 = inlined_call_operand.vmem [shape: f32[4,34], index: 0, kind: input, shape index: {}]   ;;  %s417_s1 = inlined_call_operand.vmem [shape: f32[3,8,4], index: 1, kind: input, shape index: {}]   ;;  %s418_s3 = inlined_call_operand.vmem [shape: f32[8,1], index: 3, kind: input, shape index: {}]   ;;  %s419_s2 = inlined_call_operand.vmem [shape: f32[8,1], index: 2, kind: input, shape index: {}]   ;;  %s420_s4 = inlined_call_operand.vmem [shape: f32[8,32], index: 4, kind: output, shape index: {}]  }
   0x1   :  { %v32_v1 = vld [vmem:[%s416_s0] sm:$0xf]  ;;  %334 = vmatprep.subr.mxu0 %v356_v2  ;;  %336 = vmatprep.mubr.msk.f32.mxu0 %vm357_vm0, %v356_v2  ;;  %vm49_vm3 = vcmask 31744   ;;  %v320_v8 = vld [vmem:[%s417_s1 + $0x10] sm:$0xff]  ;;  %v315_v10 = vld [vmem:[%s417_s1 + $0x8] sm:$0xff]  ;;  %vm281_vm5 = vcmask 261120  }
   0x2   :  { %40 = vrot.lane.b32.xlu0 %v32_v1, %s358_s17  ;;  %v18_v3 = vand.u32 127, %v17_v0  ;;  %329 = vmatprep.subr.mxu1 %v356_v2  ;;  %v44_v5 = vld [vmem:[%s417_s1] sm:$0xff]  ;;  %v360_v23 = vmov 0  }
   0x3   :  { %331 = vmatprep.mubr.msk.f32.mxu1 %vm357_vm0, %v356_v2  ;;  %352 = vset.pattern.permute.xlu0 %v360_v23  ;;  %v302_v24 = vld [vmem:[%s418_s3] sm:$0xff] }
   0x4   :  { %v23_v4 = vand.u32 15, %v18_v3  ;;  %353 = vset.pattern.permute.xlu1 %v360_v23  ;;  %v292_v28 = vld [vmem:[%s419_s2] sm:$0xff] }
   0x6   :  { %47 = vrot.lane.b32.xlu0 %v32_v1, %s359_s18  ;;  %vm31_vm2 = vcmp.eq.s32.totalorder %v23_v4, 0  ;;  %vm36_vm4 = vcmp.eq.s32.totalorder %v23_v4, 15 }
   0x7   :  { %v35_v6 = vsel %vm31_vm2, 0.0, %v32_v1 }
   0x8   :  { %335 = vmatpush3.msk.msra.mxu0 %vm53_vm1, %v35_v6 }
   0x9   :  { %337 = vmatmul.mubr.msk.f32.vlgmr.msra.gmra.mrb[0].mxu0 %vm49_vm3, %v44_v5  ;;  %339 = vmatprep.subr.mxu0 %v356_v2 }
   0xa   :  { %341 = vmatprep.mubr.msk.f32.mxu0 %vm357_vm0, %v356_v2 }
  0x74   :  { %v41_v7 = vpop.permute.xlu0 %40 }
  0x75   :  { %v43_v9 = vsel %vm36_vm4, 0.0, %v41_v7 }
  0x76   :  { %340 = vmatpush3.msk.msra.mxu0 %vm53_vm1, %v43_v9 }
  0x77   :  { %342 = vmatmul.mubr.msk.f32.vlgmr.msra.gmra.mrb[0].mxu0 %vm49_vm3, %v320_v8 }
  0x78   :  { %v48_v11 = vpop.permute.xlu0 %47 }
  0x79   :  { %330 = vmatpush3.msk.msra.mxu1 %vm53_vm1, %v48_v11 }
  0x7a   :  { %332 = vmatmul.mubr.msk.f32.vlgmr.msra.gmra.mrb[0].mxu1 %vm49_vm3, %v315_v10 }
 0x14a   :  { %v276_v12 = vpop.f32.mrb[0].mxu0 }
 0x14b   :  { %v343_v13 = vpop.f32.mrb[1].mxu0 }
 0x14d   :  { %v122_v14 = vpop.f32.mrb[0].mxu1 }
 0x14e   :  { %v344_v15 = vadd.f32 %v276_v12, %v122_v14  ;;  %v333_v16 = vpop.f32.mrb[1].mxu1 }
 0x150   :  { %v282_v17 = vsel %vm281_vm5, %v344_v15, 0.0 }
 0x151   :  { %283 = vadd.xlane.f32.xlu1 %v282_v17 }
 0x1de   :  { %v284_v18 = vpop.xlane.xlu1 %283 }
 0x1df   :  { %v285_v19 = vmul.f32 0.03125, %v284_v18 }
 0x1e1   :  { %v286_v20 = vsub.f32 %v344_v15, %v285_v19 }
 0x1e3   :  { %v287_v21 = vmul.f32 %v286_v20, %v286_v20 }
 0x1e5   :  { %v288_v22 = vsel %vm281_vm5, %v287_v21, 0.0 }
 0x1e6   :  { %289 = vadd.xlane.f32.xlu1 %v288_v22 }
 0x1f7   :  { %305 = vperm.xlu1 %353, %v302_v24  }
 0x273   :  { %v290_v25 = vpop.xlane.xlu1 %289 }
 0x274   :  { %v291_v26 = vmul.f32 0.03125, %v290_v25 }
 0x276   :  { %v293_v27 = vadd.f32 1e-05, %v291_v26 }
 0x277   :  { %v306_v32 = vpop.permute.xlu1 %305 }
 0x278   :  { %354 = vrsqrt.f32 %v293_v27 }
 0x282   :  { %v355_v29 = vpop.eup %354 }
 0x283   :  { %v295_v30 = vmul.f32 %v355_v29, %v292_v28 }
 0x285   :  { %298 = vperm.xlu0 %352, %v295_v30  }
 0x304   :  { %v299_v31 = vpop.permute.xlu0 %298 }
 0x305   :  { %v301_v33 = vmul.f32 %v299_v31, %v286_v20 }
 0x307   :  { %v308_v34 = vadd.f32 %v306_v32, %v301_v33 }
 0x309   :  { %v309_v35 = vmax.f32 %v308_v34, 0.0 }
 0x30b   :  { %310 = vst.msk [vmem:[%s420_s4] sm:$0xff] %vm281_vm5, %v309_v35 }

</bundles_post_ra>
